<compile_context>
chip_gen: v7x
topology: tpu7x:2x2x1
jax: 0.10.0
libtpu: 0.0.40
codegen_flags: <defaults>
</compile_context>

<pallas_src>
import math
from functools import partial

import jax
import jax.numpy as jnp
from jax.experimental import pallas as pl
from jax.experimental.pallas import tpu as pltpu


def _round_up(x: int, m: int) -> int:
    return (x + m - 1) // m * m


def _choose_tiling(L: int, max_score_bytes: int = 4 << 20) -> tuple[int, int]:
    """Return (padded_seq_len, q_tile) so the [tq, L] f32 score tile stays small."""
    if L <= 512:
        Lp = _round_up(L, 8)
        return Lp, Lp
    Lp = _round_up(L, 128)
    for t in (512, 256, 128, 64, 32, 16, 8):
        if Lp % t == 0 and t * Lp * 4 <= max_score_bytes:
            return Lp, t
    return Lp, 8


def _vmem_limit_bytes() -> int:
    """Generation-aware VMEM budget (v7x: 64 MiB/TC, v5e/v6e: 128 MiB) with headroom."""
    try:
        cap = int(pltpu.get_tpu_info().vmem_capacity_bytes)
    except Exception:  # unknown chip / interpret mode: use the smallest (v7x) budget
        cap = 64 * 1024 * 1024
    headroom = max(cap // 8, 8 * 1024 * 1024)   # leave room for Mosaic internal scratch
    return cap - headroom


def _mha_kernel(x_ref, wq_ref, bq_ref, wk_ref, bk_ref, wv_ref, bv_ref,
                wout_ref, bout_ref, o_ref, k_scr, v_scr,
                *, num_heads: int, head_dim: int, q_tile: int,
                seq_len: int, seq_pad: int):
    """Grid = (batch, q_tiles).

    x_ref    : [Lp, C]   tokens for this batch element (zero-padded to Lp)
    wq/wk/wv : [C, C]    full-width projection weights (1/sqrt(Dh) folded into wq)
    bq/bk/bv : [1, C]    f32 biases (bq scaled)
    wout_ref : [C, C]    output projection weight
    bout_ref : [1, C]    f32 output bias
    o_ref    : [tq, C]   output tile
    k_scr    : [Lp, C]   cached K projection (input dtype), filled at qi == 0
    v_scr    : [Lp, C]   cached V projection (input dtype), filled at qi == 0
    """
    qi = pl.program_id(1)
    dtype = x_ref.dtype
    H, Dh, tq, Lp = num_heads, head_dim, q_tile, seq_pad

    # ---- K/V projections at full MXU width, once per batch element --------------
    # Row-chunked so the transient f32 result stays at [tq, C].
    @pl.when(qi == 0)
    def _():
        wk = wk_ref[...]
        wv = wv_ref[...]
        bk = bk_ref[...]
        bv = bv_ref[...]
        for r0 in range(0, Lp, tq):
            xr = x_ref[r0:r0 + tq, :]
            k_scr[r0:r0 + tq, :] = (
                jnp.dot(xr, wk, preferred_element_type=jnp.float32) + bk).astype(dtype)
            v_scr[r0:r0 + tq, :] = (
                jnp.dot(xr, wv, preferred_element_type=jnp.float32) + bv).astype(dtype)

    # ---- Q projection for this q-tile, full width (scale pre-folded) ------------
    row0 = pl.multiple_of(qi * tq, tq)
    xq = x_ref[pl.ds(row0, tq), :]                                         # [tq, C]
    q_all = (jnp.dot(xq, wq_ref[...], preferred_element_type=jnp.float32)
             + bq_ref[...]).astype(dtype)                                  # [tq, C]

    # ---- additive key mask for the zero-padded tail (static choice) -------------
    if seq_pad > seq_len:
        key_pos = jax.lax.broadcasted_iota(jnp.int32, (1, Lp), 1)
        neg_mask = jnp.where(key_pos >= seq_len,
                             jnp.float32(-1e30), jnp.float32(0.0))         # [1, Lp]
    else:
        neg_mask = None

    # ---- per-head attention (statically unrolled; softmax stats in f32) ---------
    head_outs = []
    for h in range(H):
        sl = slice(h * Dh, (h + 1) * Dh)
        q_h = q_all[:, sl]                                                 # [tq, Dh]
        k_h = k_scr[:, sl]                                                 # [Lp, Dh]
        v_h = v_scr[:, sl]                                                 # [Lp, Dh]
        s = jax.lax.dot_general(q_h, k_h, (((1,), (1,)), ((), ())),        # q @ k^T
                                preferred_element_type=jnp.float32)        # [tq, Lp]
        if neg_mask is not None:
            s = s + neg_mask
        m = jnp.max(s, axis=-1, keepdims=True)
        p = jnp.exp(s - m)
        denom = jnp.sum(p, axis=-1, keepdims=True)
        attn = jnp.dot(p.astype(dtype), v_h,
                       preferred_element_type=jnp.float32)                 # [tq, Dh]
        # Normalize AFTER the PV matmul: tq*Dh multiplies instead of tq*Lp.
        attn = attn * pl.reciprocal(denom, approx=True)
        head_outs.append(attn.astype(dtype))

    h_cat = head_outs[0] if H == 1 else jnp.concatenate(head_outs, axis=-1)  # [tq, C]

    # ---- single full-width output projection per q-tile --------------------------
    out = jnp.dot(h_cat, wout_ref[...],
                  preferred_element_type=jnp.float32) + bout_ref[...]
    o_ref[...] = out.astype(o_ref.dtype)


def multi_head_attention(x, w_qkv, b_qkv, w_out, b_out, *, num_heads: int,
                         q_tile: int | None = None):
    """x: [B, L, C]; w_qkv: [3C, C] (torch layout); b_qkv: [3C];
       w_out: [C, C]; b_out: [C]."""
    B, L, C = x.shape
    H = num_heads
    assert C % H == 0
    Dh = C // H
    scale = 1.0 / math.sqrt(Dh)

    if q_tile is None:
        L_pad, q_tile = _choose_tiling(L)
    else:
        q_tile = _round_up(max(q_tile, 8), 8)
        L_pad = _round_up(L, q_tile)
    n_q = L_pad // q_tile

    xp = x if L_pad == L else jnp.pad(x, ((0, 0), (0, L_pad - L), (0, 0)))

    # ---- weight prep (outside the kernel, one-time) ------------------------------
    # torch Linear: y = x @ W.T + b; to_qkv output features ordered (3, H, Dh), so the
    # q/k/v blocks are already head-major along the lane axis (matches the in-kernel
    # per-head lane slices and the head concatenation order).
    wq = (jnp.transpose(w_qkv[:C]) * scale).astype(x.dtype)        # [C, C] (scaled)
    wk = jnp.transpose(w_qkv[C:2 * C]).astype(x.dtype)             # [C, C]
    wv = jnp.transpose(w_qkv[2 * C:]).astype(x.dtype)              # [C, C]
    bq = (b_qkv[:C] * scale).reshape(1, C).astype(jnp.float32)
    bk = b_qkv[C:2 * C].reshape(1, C).astype(jnp.float32)
    bv = b_qkv[2 * C:].reshape(1, C).astype(jnp.float32)
    wout = jnp.transpose(w_out).astype(x.dtype)                    # [C, C]
    bout = b_out.reshape(1, C).astype(jnp.float32)

    kernel = partial(_mha_kernel, num_heads=H, head_dim=Dh, q_tile=q_tile,
                     seq_len=L, seq_pad=L_pad)
    const2 = lambda b, qi: (0, 0)

    out = pl.pallas_call(
        kernel,
        out_shape=jax.ShapeDtypeStruct((B, L_pad, C), x.dtype),
        grid_spec=pltpu.PrefetchScalarGridSpec(
            num_scalar_prefetch=0,
            grid=(B, n_q),
            in_specs=[
                pl.BlockSpec((None, L_pad, C), lambda b, qi: (b, 0, 0)),  # x (per batch)
                pl.BlockSpec((C, C), const2),                             # Wq (scaled)
                pl.BlockSpec((1, C), const2),                             # bq (scaled)
                pl.BlockSpec((C, C), const2),                             # Wk
                pl.BlockSpec((1, C), const2),                             # bk
                pl.BlockSpec((C, C), const2),                             # Wv
                pl.BlockSpec((1, C), const2),                             # bv
                pl.BlockSpec((C, C), const2),                             # Wout
                pl.BlockSpec((1, C), const2),                             # bout
            ],
            out_specs=pl.BlockSpec((None, q_tile, C), lambda b, qi: (b, qi, 0)),
            scratch_shapes=[
                pltpu.VMEM((L_pad, C), x.dtype),   # K cache
                pltpu.VMEM((L_pad, C), x.dtype),   # V cache
            ],
        ),
        compiler_params=pltpu.CompilerParams(
            dimension_semantics=("parallel", "arbitrary"),
            vmem_limit_bytes=_vmem_limit_bytes(),
        ),
    )(xp, wq, bq, wk, bk, wv, bv, wout, bout)

    return out if L_pad == L else out[:, :L]


def _reference(x, w_qkv, b_qkv, w_out, b_out, num_heads):
    """Pure-JAX reference matching the PyTorch forward (default flags)."""
    B, L, C = x.shape
    Dh = C // num_heads
    qkv = jnp.einsum('blc,oc->blo', x, w_qkv) + b_qkv               # [B, L, 3C]
    qkv = qkv.reshape(B, L, 3, num_heads, Dh)
    q, k, v = qkv[:, :, 0], qkv[:, :, 1], qkv[:, :, 2]              # [B, L, H, Dh]
    s = jnp.einsum('blhd,bmhd->bhlm', q, k) / math.sqrt(Dh)
    p = jax.nn.softmax(s, axis=-1)
    h = jnp.einsum('bhlm,bmhd->blhd', p, v).reshape(B, L, C)
    return jnp.einsum('blc,oc->blo', h, w_out) + b_out


if __name__ == "__main__":
    batch, length, channels, num_heads = 2, 8, 32, 4

    key = jax.random.PRNGKey(0)
    kx, kw1, kb1, kw2, kb2 = jax.random.split(key, 5)

    x = jax.random.normal(kx, (batch, length, channels), dtype=jnp.float32)
    w_qkv = jax.random.normal(kw1, (3 * channels, channels), jnp.float32) * 0.05
    b_qkv = jax.random.normal(kb1, (3 * channels,), jnp.float32) * 0.05
    w_out = jax.random.normal(kw2, (channels, channels), jnp.float32) * 0.05
    b_out = jax.random.normal(kb2, (channels,), jnp.float32) * 0.05

    out = multi_head_attention(x, w_qkv, b_qkv, w_out, b_out, num_heads=num_heads)
    out = jax.block_until_ready(out)
    ref = _reference(x, w_qkv, b_qkv, w_out, b_out, num_heads)
    assert out.shape == (batch, length, channels)
    assert jnp.allclose(out, ref, atol=2e-3, rtol=2e-3), "mismatch vs reference"

    # Multi-q-tile path (KV cache reuse across q-tiles + per-tile wide projections).
    x2 = jax.random.normal(jax.random.PRNGKey(1), (batch, 16, channels), jnp.float32)
    out2 = jax.block_until_ready(
        multi_head_attention(x2, w_qkv, b_qkv, w_out, b_out,
                             num_heads=num_heads, q_tile=8))
    ref2 = _reference(x2, w_qkv, b_qkv, w_out, b_out, num_heads)
    assert jnp.allclose(out2, ref2, atol=2e-3, rtol=2e-3), "mismatch vs reference (tiled)"

    # Non-multiple-of-8 sequence length: zero-padded keys + additive score mask path.
    x3 = jax.random.normal(jax.random.PRNGKey(2), (batch, 12, channels), jnp.float32)
    out3 = jax.block_until_ready(
        multi_head_attention(x3, w_qkv, b_qkv, w_out, b_out, num_heads=num_heads))
    ref3 = _reference(x3, w_qkv, b_qkv, w_out, b_out, num_heads)
    assert out3.shape == (batch, 12, channels)
    assert jnp.allclose(out3, ref3, atol=2e-3, rtol=2e-3), "mismatch vs reference (padded)"

    print("KERNEL_OK")
</pallas_src>

<mosaic_0001>
module attributes {stable_mosaic.version = 11 : i64} {
  func.func @_mha_kernel(%arg0: i32, %arg1: i32, %arg2: memref<1x8x32xf32, #tpu.memory_space<vmem>>, %arg3: memref<32x32xf32, #tpu.memory_space<vmem>>, %arg4: memref<1x32xf32, #tpu.memory_space<vmem>>, %arg5: memref<32x32xf32, #tpu.memory_space<vmem>>, %arg6: memref<1x32xf32, #tpu.memory_space<vmem>>, %arg7: memref<32x32xf32, #tpu.memory_space<vmem>>, %arg8: memref<1x32xf32, #tpu.memory_space<vmem>>, %arg9: memref<32x32xf32, #tpu.memory_space<vmem>>, %arg10: memref<1x32xf32, #tpu.memory_space<vmem>>, %arg11: memref<1x8x32xf32, #tpu.memory_space<vmem>>, %arg12: memref<8x32xf32, #tpu.memory_space<vmem>>, %arg13: memref<8x32xf32, #tpu.memory_space<vmem>>) attributes {dimension_semantics = [#tpu.dimension_semantics<parallel>, #tpu.dimension_semantics<arbitrary>], iteration_bounds = array<i64: 2, 1>, scalar_prefetch = 0 : i64, scratch_operands = 2 : i64, tpu.core_type = #tpu.core_type<tc>, window_params = [{transform_indices = @transform_0, window_bounds = array<i64: 1, 8, 32>}, {pipeline_mode = #tpu.pipeline_mode<synchronous>, transform_indices = @transform_1, window_bounds = array<i64: 32, 32>}, {pipeline_mode = #tpu.pipeline_mode<synchronous>, transform_indices = @transform_2, window_bounds = array<i64: 1, 32>}, {pipeline_mode = #tpu.pipeline_mode<synchronous>, transform_indices = @transform_3, window_bounds = array<i64: 32, 32>}, {pipeline_mode = #tpu.pipeline_mode<synchronous>, transform_indices = @transform_4, window_bounds = array<i64: 1, 32>}, {pipeline_mode = #tpu.pipeline_mode<synchronous>, transform_indices = @transform_5, window_bounds = array<i64: 32, 32>}, {pipeline_mode = #tpu.pipeline_mode<synchronous>, transform_indices = @transform_6, window_bounds = array<i64: 1, 32>}, {pipeline_mode = #tpu.pipeline_mode<synchronous>, transform_indices = @transform_7, window_bounds = array<i64: 32, 32>}, {pipeline_mode = #tpu.pipeline_mode<synchronous>, transform_indices = @transform_8, window_bounds = array<i64: 1, 32>}, {transform_indices = @transform_9, window_bounds = array<i64: 1, 8, 32>}]} {
    %c0_i32 = arith.constant 0 : i32
    %0 = arith.cmpi eq, %arg1, %c0_i32 : i32
    %1 = arith.extui %0 : i1 to i32
    %c0_i32_0 = arith.constant 0 : i32
    %2 = arith.cmpi ne, %1, %c0_i32_0 : i32
    scf.if %2 {
      %c0_43 = arith.constant 0 : index
      %c0_44 = arith.constant 0 : index
      %82 = vector.load %arg5[%c0_43, %c0_44] : memref<32x32xf32, #tpu.memory_space<vmem>>, vector<32x32xf32>
      %c0_45 = arith.constant 0 : index
      %c0_46 = arith.constant 0 : index
      %83 = vector.load %arg7[%c0_45, %c0_46] : memref<32x32xf32, #tpu.memory_space<vmem>>, vector<32x32xf32>
      %c0_47 = arith.constant 0 : index
      %c0_48 = arith.constant 0 : index
      %84 = vector.load %arg6[%c0_47, %c0_48] : memref<1x32xf32, #tpu.memory_space<vmem>>, vector<1x32xf32>
      %c0_49 = arith.constant 0 : index
      %c0_50 = arith.constant 0 : index
      %85 = vector.load %arg8[%c0_49, %c0_50] : memref<1x32xf32, #tpu.memory_space<vmem>>, vector<1x32xf32>
      %c0_51 = arith.constant 0 : index
      %c0_52 = arith.constant 0 : index
      %c0_53 = arith.constant 0 : index
      %86 = vector.load %arg2[%c0_51, %c0_52, %c0_53] : memref<1x8x32xf32, #tpu.memory_space<vmem>>, vector<1x8x32xf32>
      %87 = vector.shape_cast %86 : vector<1x8x32xf32> to vector<8x32xf32>
      %cst_54 = arith.constant dense<0.000000e+00> : vector<8x32xf32>
      %88 = tpu.matmul %87, %82, %cst_54 {dimension_numbers = #tpu.dot_dimension_numbers<[1], [0], [0], [1], [0, 0, 1, 1], [], []>} : vector<8x32xf32>, vector<32x32xf32>, vector<8x32xf32> -> vector<8x32xf32>
      %89 = vector.broadcast %84 : vector<1x32xf32> to vector<8x32xf32>
      %90 = arith.addf %88, %89 : vector<8x32xf32>
      %c0_55 = arith.constant 0 : index
      %c0_56 = arith.constant 0 : index
      %91 = vector.load %arg12[%c0_55, %c0_56] : memref<8x32xf32, #tpu.memory_space<vmem>>, vector<8x32xf32>
      tpu.vector_store %arg12[%c0_55, %c0_56], %90 {strides = array<i32>} : memref<8x32xf32, #tpu.memory_space<vmem>>, vector<8x32xf32>,
      %cst_57 = arith.constant dense<0.000000e+00> : vector<8x32xf32>
      %92 = tpu.matmul %87, %83, %cst_57 {dimension_numbers = #tpu.dot_dimension_numbers<[1], [0], [0], [1], [0, 0, 1, 1], [], []>} : vector<8x32xf32>, vector<32x32xf32>, vector<8x32xf32> -> vector<8x32xf32>
      %93 = vector.broadcast %85 : vector<1x32xf32> to vector<8x32xf32>
      %94 = arith.addf %92, %93 : vector<8x32xf32>
      %c0_58 = arith.constant 0 : index
      %c0_59 = arith.constant 0 : index
      %95 = vector.load %arg13[%c0_58, %c0_59] : memref<8x32xf32, #tpu.memory_space<vmem>>, vector<8x32xf32>
      tpu.vector_store %arg13[%c0_58, %c0_59], %94 {strides = array<i32>} : memref<8x32xf32, #tpu.memory_space<vmem>>, vector<8x32xf32>,
    } else {
    }
    %c8_i32 = arith.constant 8 : i32
    %3 = arith.muli %arg1, %c8_i32 : i32
    %4 = tpu.assume_multiple %3, 8 : i32
    %c0 = arith.constant 0 : index
    %5 = arith.index_cast %4 : i32 to index
    %c0_1 = arith.constant 0 : index
    %6 = vector.load %arg2[%c0, %5, %c0_1] : memref<1x8x32xf32, #tpu.memory_space<vmem>>, vector<1x8x32xf32>
    %7 = vector.shape_cast %6 : vector<1x8x32xf32> to vector<8x32xf32>
    %c0_2 = arith.constant 0 : index
    %c0_3 = arith.constant 0 : index
    %8 = vector.load %arg3[%c0_2, %c0_3] : memref<32x32xf32, #tpu.memory_space<vmem>>, vector<32x32xf32>
    %cst = arith.constant dense<0.000000e+00> : vector<8x32xf32>
    %9 = tpu.matmul %7, %8, %cst {dimension_numbers = #tpu.dot_dimension_numbers<[1], [0], [0], [1], [0, 0, 1, 1], [], []>} : vector<8x32xf32>, vector<32x32xf32>, vector<8x32xf32> -> vector<8x32xf32>
    %c0_4 = arith.constant 0 : index
    %c0_5 = arith.constant 0 : index
    %10 = vector.load %arg4[%c0_4, %c0_5] : memref<1x32xf32, #tpu.memory_space<vmem>>, vector<1x32xf32>
    %11 = vector.broadcast %10 : vector<1x32xf32> to vector<8x32xf32>
    %12 = arith.addf %9, %11 : vector<8x32xf32>
    %13 = vector.extract_strided_slice %12 {offsets = [0, 0], sizes = [8, 8], strides = [1, 1]} : vector<8x32xf32> to vector<8x8xf32>
    %c0_6 = arith.constant 0 : index
    %c0_7 = arith.constant 0 : index
    %14 = vector.load %arg12[%c0_6, %c0_7] : memref<8x32xf32, #tpu.memory_space<vmem>>, vector<8x8xf32>
    %c0_8 = arith.constant 0 : index
    %c0_9 = arith.constant 0 : index
    %15 = vector.load %arg13[%c0_8, %c0_9] : memref<8x32xf32, #tpu.memory_space<vmem>>, vector<8x8xf32>
    %cst_10 = arith.constant dense<0.000000e+00> : vector<8x8xf32>
    %16 = tpu.matmul %13, %14, %cst_10 {dimension_numbers = #tpu.dot_dimension_numbers<[1], [1], [0], [0], [0, 0, 1, 0], [], []>} : vector<8x8xf32>, vector<8x8xf32>, vector<8x8xf32> -> vector<8x8xf32>
    %cst_11 = arith.constant dense<0xFF800000> : vector<8xf32>
    %17 = vector.multi_reduction <maximumf>, %16, %cst_11 [1] : vector<8x8xf32> to vector<8xf32>
    %18 = vector.shape_cast %17 : vector<8xf32> to vector<8x1xf32>
    %19 = vector.broadcast %18 : vector<8x1xf32> to vector<8x8xf32>
    %20 = arith.subf %16, %19 : vector<8x8xf32>
    %21 = math.exp %20 : vector<8x8xf32>
    %cst_12 = arith.constant dense<0.000000e+00> : vector<8xf32>
    %22 = vector.multi_reduction <add>, %21, %cst_12 [1] : vector<8x8xf32> to vector<8xf32>
    %23 = vector.shape_cast %22 : vector<8xf32> to vector<8x1xf32>
    %cst_13 = arith.constant dense<0.000000e+00> : vector<8x8xf32>
    %24 = tpu.matmul %21, %15, %cst_13 {dimension_numbers = #tpu.dot_dimension_numbers<[1], [0], [0], [1], [0, 0, 1, 1], [], []>} : vector<8x8xf32>, vector<8x8xf32>, vector<8x8xf32> -> vector<8x8xf32>
    %25 = tpu.reciprocal %23 {approx = true} : vector<8x1xf32> -> vector<8x1xf32>
    %26 = vector.broadcast %25 : vector<8x1xf32> to vector<8x8xf32>
    %27 = arith.mulf %24, %26 : vector<8x8xf32>
    %28 = vector.extract_strided_slice %12 {offsets = [0, 8], sizes = [8, 8], strides = [1, 1]} : vector<8x32xf32> to vector<8x8xf32>
    %c0_14 = arith.constant 0 : index
    %c8 = arith.constant 8 : index
    %29 = vector.load %arg12[%c0_14, %c8] : memref<8x32xf32, #tpu.memory_space<vmem>>, vector<8x8xf32>
    %c0_15 = arith.constant 0 : index
    %c8_16 = arith.constant 8 : index
    %30 = vector.load %arg13[%c0_15, %c8_16] : memref<8x32xf32, #tpu.memory_space<vmem>>, vector<8x8xf32>
    %cst_17 = arith.constant dense<0.000000e+00> : vector<8x8xf32>
    %31 = tpu.matmul %28, %29, %cst_17 {dimension_numbers = #tpu.dot_dimension_numbers<[1], [1], [0], [0], [0, 0, 1, 0], [], []>} : vector<8x8xf32>, vector<8x8xf32>, vector<8x8xf32> -> vector<8x8xf32>
    %cst_18 = arith.constant dense<0xFF800000> : vector<8xf32>
    %32 = vector.multi_reduction <maximumf>, %31, %cst_18 [1] : vector<8x8xf32> to vector<8xf32>
    %33 = vector.shape_cast %32 : vector<8xf32> to vector<8x1xf32>
    %34 = vector.broadcast %33 : vector<8x1xf32> to vector<8x8xf32>
    %35 = arith.subf %31, %34 : vector<8x8xf32>
    %36 = math.exp %35 : vector<8x8xf32>
    %cst_19 = arith.constant dense<0.000000e+00> : vector<8xf32>
    %37 = vector.multi_reduction <add>, %36, %cst_19 [1] : vector<8x8xf32> to vector<8xf32>
    %38 = vector.shape_cast %37 : vector<8xf32> to vector<8x1xf32>
    %cst_20 = arith.constant dense<0.000000e+00> : vector<8x8xf32>
    %39 = tpu.matmul %36, %30, %cst_20 {dimension_numbers = #tpu.dot_dimension_numbers<[1], [0], [0], [1], [0, 0, 1, 1], [], []>} : vector<8x8xf32>, vector<8x8xf32>, vector<8x8xf32> -> vector<8x8xf32>
    %40 = tpu.reciprocal %38 {approx = true} : vector<8x1xf32> -> vector<8x1xf32>
    %41 = vector.broadcast %40 : vector<8x1xf32> to vector<8x8xf32>
    %42 = arith.mulf %39, %41 : vector<8x8xf32>
    %43 = vector.extract_strided_slice %12 {offsets = [0, 16], sizes = [8, 8], strides = [1, 1]} : vector<8x32xf32> to vector<8x8xf32>
    %c0_21 = arith.constant 0 : index
    %c16 = arith.constant 16 : index
    %44 = vector.load %arg12[%c0_21, %c16] : memref<8x32xf32, #tpu.memory_space<vmem>>, vector<8x8xf32>
    %c0_22 = arith.constant 0 : index
    %c16_23 = arith.constant 16 : index
    %45 = vector.load %arg13[%c0_22, %c16_23] : memref<8x32xf32, #tpu.memory_space<vmem>>, vector<8x8xf32>
    %cst_24 = arith.constant dense<0.000000e+00> : vector<8x8xf32>
    %46 = tpu.matmul %43, %44, %cst_24 {dimension_numbers = #tpu.dot_dimension_numbers<[1], [1], [0], [0], [0, 0, 1, 0], [], []>} : vector<8x8xf32>, vector<8x8xf32>, vector<8x8xf32> -> vector<8x8xf32>
    %cst_25 = arith.constant dense<0xFF800000> : vector<8xf32>
    %47 = vector.multi_reduction <maximumf>, %46, %cst_25 [1] : vector<8x8xf32> to vector<8xf32>
    %48 = vector.shape_cast %47 : vector<8xf32> to vector<8x1xf32>
    %49 = vector.broadcast %48 : vector<8x1xf32> to vector<8x8xf32>
    %50 = arith.subf %46, %49 : vector<8x8xf32>
    %51 = math.exp %50 : vector<8x8xf32>
    %cst_26 = arith.constant dense<0.000000e+00> : vector<8xf32>
    %52 = vector.multi_reduction <add>, %51, %cst_26 [1] : vector<8x8xf32> to vector<8xf32>
    %53 = vector.shape_cast %52 : vector<8xf32> to vector<8x1xf32>
    %cst_27 = arith.constant dense<0.000000e+00> : vector<8x8xf32>
    %54 = tpu.matmul %51, %45, %cst_27 {dimension_numbers = #tpu.dot_dimension_numbers<[1], [0], [0], [1], [0, 0, 1, 1], [], []>} : vector<8x8xf32>, vector<8x8xf32>, vector<8x8xf32> -> vector<8x8xf32>
    %55 = tpu.reciprocal %53 {approx = true} : vector<8x1xf32> -> vector<8x1xf32>
    %56 = vector.broadcast %55 : vector<8x1xf32> to vector<8x8xf32>
    %57 = arith.mulf %54, %56 : vector<8x8xf32>
    %58 = vector.extract_strided_slice %12 {offsets = [0, 24], sizes = [8, 8], strides = [1, 1]} : vector<8x32xf32> to vector<8x8xf32>
    %c0_28 = arith.constant 0 : index
    %c24 = arith.constant 24 : index
    %59 = vector.load %arg12[%c0_28, %c24] : memref<8x32xf32, #tpu.memory_space<vmem>>, vector<8x8xf32>
    %c0_29 = arith.constant 0 : index
    %c24_30 = arith.constant 24 : index
    %60 = vector.load %arg13[%c0_29, %c24_30] : memref<8x32xf32, #tpu.memory_space<vmem>>, vector<8x8xf32>
    %cst_31 = arith.constant dense<0.000000e+00> : vector<8x8xf32>
    %61 = tpu.matmul %58, %59, %cst_31 {dimension_numbers = #tpu.dot_dimension_numbers<[1], [1], [0], [0], [0, 0, 1, 0], [], []>} : vector<8x8xf32>, vector<8x8xf32>, vector<8x8xf32> -> vector<8x8xf32>
    %cst_32 = arith.constant dense<0xFF800000> : vector<8xf32>
    %62 = vector.multi_reduction <maximumf>, %61, %cst_32 [1] : vector<8x8xf32> to vector<8xf32>
    %63 = vector.shape_cast %62 : vector<8xf32> to vector<8x1xf32>
    %64 = vector.broadcast %63 : vector<8x1xf32> to vector<8x8xf32>
    %65 = arith.subf %61, %64 : vector<8x8xf32>
    %66 = math.exp %65 : vector<8x8xf32>
    %cst_33 = arith.constant dense<0.000000e+00> : vector<8xf32>
    %67 = vector.multi_reduction <add>, %66, %cst_33 [1] : vector<8x8xf32> to vector<8xf32>
    %68 = vector.shape_cast %67 : vector<8xf32> to vector<8x1xf32>
    %cst_34 = arith.constant dense<0.000000e+00> : vector<8x8xf32>
    %69 = tpu.matmul %66, %60, %cst_34 {dimension_numbers = #tpu.dot_dimension_numbers<[1], [0], [0], [1], [0, 0, 1, 1], [], []>} : vector<8x8xf32>, vector<8x8xf32>, vector<8x8xf32> -> vector<8x8xf32>
    %70 = tpu.reciprocal %68 {approx = true} : vector<8x1xf32> -> vector<8x1xf32>
    %71 = vector.broadcast %70 : vector<8x1xf32> to vector<8x8xf32>
    %72 = arith.mulf %69, %71 : vector<8x8xf32>
    %73 = tpu.concatenate %27, %42, %57, %72 in 1 : vector<8x8xf32>, vector<8x8xf32>, vector<8x8xf32>, vector<8x8xf32> -> vector<8x32xf32>
    %c0_35 = arith.constant 0 : index
    %c0_36 = arith.constant 0 : index
    %74 = vector.load %arg9[%c0_35, %c0_36] : memref<32x32xf32, #tpu.memory_space<vmem>>, vector<32x32xf32>
    %cst_37 = arith.constant dense<0.000000e+00> : vector<8x32xf32>
    %75 = tpu.matmul %73, %74, %cst_37 {dimension_numbers = #tpu.dot_dimension_numbers<[1], [0], [0], [1], [0, 0, 1, 1], [], []>} : vector<8x32xf32>, vector<32x32xf32>, vector<8x32xf32> -> vector<8x32xf32>
    %c0_38 = arith.constant 0 : index
    %c0_39 = arith.constant 0 : index
    %76 = vector.load %arg10[%c0_38, %c0_39] : memref<1x32xf32, #tpu.memory_space<vmem>>, vector<1x32xf32>
    %77 = vector.broadcast %76 : vector<1x32xf32> to vector<8x32xf32>
    %78 = arith.addf %75, %77 : vector<8x32xf32>
    %c0_40 = arith.constant 0 : index
    %c0_41 = arith.constant 0 : index
    %c0_42 = arith.constant 0 : index
    %79 = vector.load %arg11[%c0_40, %c0_41, %c0_42] : memref<1x8x32xf32, #tpu.memory_space<vmem>>, vector<1x8x32xf32>
    %80 = vector.shape_cast %79 : vector<1x8x32xf32> to vector<8x32xf32>
    %81 = vector.shape_cast %78 : vector<8x32xf32> to vector<1x8x32xf32>
    tpu.vector_store %arg11[%c0_40, %c0_41, %c0_42], %81 {strides = array<i32>} : memref<1x8x32xf32, #tpu.memory_space<vmem>>, vector<1x8x32xf32>,
    return
  }
  func.func @transform_0(%arg0: i32, %arg1: i32) -> (i32, i32, i32) {
    %c0_i32 = arith.constant 0 : i32
    %c0_i32_0 = arith.constant 0 : i32
    %c0_i32_1 = arith.constant 0 : i32
    return %arg0, %c0_i32, %c0_i32_0 : i32, i32, i32
  }
  func.func @transform_1(%arg0: i32, %arg1: i32) -> (i32, i32) {
    %c0_i32 = arith.constant 0 : i32
    %c0_i32_0 = arith.constant 0 : i32
    %c0_i32_1 = arith.constant 0 : i32
    return %c0_i32, %c0_i32_0 : i32, i32
  }
  func.func @transform_2(%arg0: i32, %arg1: i32) -> (i32, i32) {
    %c0_i32 = arith.constant 0 : i32
    %c0_i32_0 = arith.constant 0 : i32
    %c0_i32_1 = arith.constant 0 : i32
    return %c0_i32, %c0_i32_0 : i32, i32
  }
  func.func @transform_3(%arg0: i32, %arg1: i32) -> (i32, i32) {
    %c0_i32 = arith.constant 0 : i32
    %c0_i32_0 = arith.constant 0 : i32
    %c0_i32_1 = arith.constant 0 : i32
    return %c0_i32, %c0_i32_0 : i32, i32
  }
  func.func @transform_4(%arg0: i32, %arg1: i32) -> (i32, i32) {
    %c0_i32 = arith.constant 0 : i32
    %c0_i32_0 = arith.constant 0 : i32
    %c0_i32_1 = arith.constant 0 : i32
    return %c0_i32, %c0_i32_0 : i32, i32
  }
  func.func @transform_5(%arg0: i32, %arg1: i32) -> (i32, i32) {
    %c0_i32 = arith.constant 0 : i32
    %c0_i32_0 = arith.constant 0 : i32
    %c0_i32_1 = arith.constant 0 : i32
    return %c0_i32, %c0_i32_0 : i32, i32
  }
  func.func @transform_6(%arg0: i32, %arg1: i32) -> (i32, i32) {
    %c0_i32 = arith.constant 0 : i32
    %c0_i32_0 = arith.constant 0 : i32
    %c0_i32_1 = arith.constant 0 : i32
    return %c0_i32, %c0_i32_0 : i32, i32
  }
  func.func @transform_7(%arg0: i32, %arg1: i32) -> (i32, i32) {
    %c0_i32 = arith.constant 0 : i32
    %c0_i32_0 = arith.constant 0 : i32
    %c0_i32_1 = arith.constant 0 : i32
    return %c0_i32, %c0_i32_0 : i32, i32
  }
  func.func @transform_8(%arg0: i32, %arg1: i32) -> (i32, i32) {
    %c0_i32 = arith.constant 0 : i32
    %c0_i32_0 = arith.constant 0 : i32
    %c0_i32_1 = arith.constant 0 : i32
    return %c0_i32, %c0_i32_0 : i32, i32
  }
  func.func @transform_9(%arg0: i32, %arg1: i32) -> (i32, i32, i32) {
    %c0_i32 = arith.constant 0 : i32
    %c0_i32_0 = arith.constant 0 : i32
    return %arg0, %arg1, %c0_i32 : i32, i32, i32
  }
}

</mosaic_0001>

<bundles_post_ra>
// kernel: tpu_custom_call.1
= control target key start
LH: loop header
LB: loop body
LE: loop exit
PB: predicated region body
PF: predicated region fallthrough
CT: control target
= control target key end

     0   :  { %s2592_s0 = inlined_call_operand.hbm [shape: f32[2,8,32], index: 0, kind: input, shape index: {}]   ;;  %s2593_s1 = inlined_call_operand.hbm [shape: f32[32,32], index: 1, kind: input, shape index: {}]   ;;  %s2594_s2 = inlined_call_operand.vmem [shape: f32[1,32], index: 2, kind: input, shape index: {}]   ;;  %s2595_s3 = inlined_call_operand.hbm [shape: f32[32,32], index: 3, kind: input, shape index: {}]   ;;  %s2596_s4 = inlined_call_operand.vmem [shape: f32[1,32], index: 4, kind: input, shape index: {}]   ;;  %s2597_s5 = inlined_call_operand.hbm [shape: f32[32,32], index: 5, kind: input, shape index: {}]   ;;  %s2598_s6 = inlined_call_operand.vmem [shape: f32[1,32], index: 6, kind: input, shape index: {}]   ;;  %s2599_s7 = inlined_call_operand.hbm [shape: f32[32,32], index: 7, kind: input, shape index: {}]   ;;  %s2600_s8 = inlined_call_operand.vmem [shape: f32[1,32], index: 8, kind: input, shape index: {}]   ;;  %s2601_s9 = inlined_call_operand.hbm [shape: f32[2,8,32], index: 9, kind: output, shape index: {}]  }
   0x1   :  { %2608 = sst [smem:[#allocation19_spill]] %s2593_s1 }
   0x2   :  { %2609 = sst [smem:[#allocation20_spill]] %s2600_s8 }
   0x3   :  { %2610 = sst [smem:[#allocation21_spill]] %s2601_s9 }
   0x4   :  { %14 = vsyncpa [#allocation5], 0 }
   0x5   :  { %16 = vsyncpa [#allocation5 + $0x1], 0 }
   0x6   :  { %17 = vsyncpa [#allocation8], 0 }
   0x7   :  { %18 = vsyncpa [#allocation11], 0 }
   0x8   :  { %19 = vsyncpa [#allocation6], 0 }
   0x9   :  { %21 = vsyncpa [#allocation6 + $0x1], 0  ;;  %s2192_s30 = smov 0   ;;  %s2194_s10 = smov 0  }
   0xa   :  { %s2196_s11 = smov 0   ;;  %s2198_s12 = smov 0  }
   0xb   :  { %s2200_s13 = smov 0   ;;  %s2202_s14 = smov 0  }
   0xc LB: > { %2611 = sst [smem:[#allocation18_spill]] %s2115_s12  ;;  %s2602_s15 = sadd.s32 4294967295, %s2123_s14   ;;  %s2123_s14 = sphi %s2202_s14, %s27_s14   ;;  %s2119_s13 = sphi %s2200_s13, %s2636_s13   ;;  %s2115_s12 = sphi %s2198_s12, %s2635_s12   ;;  %s2111_s11 = sphi %s2196_s11, %s2634_s11   ;;  %s2107_s10 = sphi %s2194_s10, %s2633_s10   ;;  %s2103_s30 = sphi %s2192_s30, %s2632_s30  }
   0xd   : > { %p1578_p0 = scmp.ge.s32.totalorder %s2123_s14, 1  ;;  %p2226_p1 = scmp.eq.s32.totalorder %s2602_s15, 0 }
   0xe   : > { %p266_p2 = scmp.lt.s32.totalorder %s2123_s14, 3  ;;  %s2125_s18 = smov [#allocation7]  }
   0xf   : > { %s2612_s16 = scalar_select %p2226_p1, 1, 0 }
  0x10   : > { %p2231_p3 = pnand %p1578_p0, %p266_p2  ;;  %s278_s19 = sshll.u32 %s2125_s18, 4  ;;  %s2235_s19 = int_to_ptr.vmem [resolvable:$true] %s278_s19 }
  0x11   : > { %s2126_s21 = smov [#allocation10]   ;;  %s2127_s23 = smov [#allocation9]  }
  0x12   : > { %s2613_s17 = scalar_select %p2231_p3, 1, 0 }
  0x13   : > { %p1781_p4 = pneg %p2231_p3  ;;  %s310_s22 = sshll.u32 %s2126_s21, 4  ;;  %s2246_s22 = int_to_ptr.vmem [resolvable:$true] %s310_s22 }
  0x14   : > { %s2248_s24 = sshll.u32 %s2127_s23, 4  ;;  %s2615_s1 = sld [smem:[#allocation19_spill]]  ;;  %s295_s24 = int_to_ptr.vmem [resolvable:$true] %s2248_s24 }
  0x15   : > { %p2242_p6 = pnand %p1781_p4, %p2226_p1 }
  0x17   : > { %p2258_p8 = pneg %p2242_p6 }
  0x1a   : > { %s1891_s27 = scalar_lea.hbm %s2615_s1, 512 }
  0x1b   : > { %p1892_p7 = scmp.ne.s32.totalorder %s2615_s1, %s1891_s27  ;;  %p1898_p11 = scmp.lt.u32.totalorder %s1891_s27, %s2615_s1 }
  0x1d   : > { %p1894_p9 = pnand %p2258_p8, %p1892_p7 }
  0x1f   : > { %p1895_p10 = pneg %p1894_p9 }
  0x21   : > { %p1900_p12 = pnand %p1898_p11, %p1895_p10 }
  0x23   : > { %1903 = shalt.err (!%p1900_p12)
}
  0x24   : > { %s1904_s25 = scalar_lea.vmem %s2235_s19, 512  ;;  %p1912_p4 = scmp.lt.s32.totalorder %s2235_s19, %s2235_s19 }
  0x25   : > { %p1905_p13 = scmp.ne.s32.totalorder %s2235_s19, %s1904_s25  ;;  %p1913_p5 = scmp.lt.s32.totalorder %s1904_s25, %s1904_s25 }
  0x27   : > { %p1907_p0 = pnand %p1905_p13, %p2258_p8  ;;  %p1914_p7 = por %p1913_p5, %p1912_p4 }
  0x29   : > { %p1908_p2 = pneg %p1907_p0 }
  0x2b   : > { %p1915_p9 = pnand %p1914_p7, %p1908_p2 }
  0x2d   : > { %1918 = shalt.err (!%p1915_p9)
}
  0x2e   : > { %s2128_s26 = smov 128   ;;  %s2129_s27 = smov 8  }
  0x2f   : > { %1784 = dma.hbm_to_vmem [thread:$0]  (!%p2242_p6), %s2615_s1, 512, %s2235_s19, [#allocation8], %s2128_s26, %s2128_s26, %s2129_s27  }
  0x30   : > { %s1919_s25 = scalar_lea.hbm %s2597_s5, 512 }
  0x31   : > { %p1920_p5 = scmp.ne.s32.totalorder %s2597_s5, %s1919_s25  ;;  %p1926_p12 = scmp.lt.u32.totalorder %s1919_s25, %s2597_s5 }
  0x33   : > { %p1922_p10 = pnand %p1920_p5, %p2258_p8 }
  0x35   : > { %p1923_p11 = pneg %p1922_p10 }
  0x37   : > { %p1928_p13 = pnand %p1926_p12, %p1923_p11 }
  0x39   : > { %1931 = shalt.err (!%p1928_p13)
}
  0x3a   : > { %s1932_s19 = scalar_lea.vmem %s2246_s22, 512  ;;  %p1940_p7 = scmp.lt.s32.totalorder %s2246_s22, %s2246_s22 }
  0x3b   : > { %p1933_p0 = scmp.ne.s32.totalorder %s2246_s22, %s1932_s19  ;;  %p1941_p9 = scmp.lt.s32.totalorder %s1932_s19, %s1932_s19 }
  0x3d   : > { %p1935_p2 = pnand %p1933_p0, %p2258_p8  ;;  %p1942_p5 = por %p1941_p9, %p1940_p7 }
  0x3f   : > { %p1936_p4 = pneg %p1935_p2 }
  0x41   : > { %p1943_p10 = pnand %p1942_p5, %p1936_p4 }
  0x43   : > { %1946 = shalt.err (!%p1943_p10)
}
  0x44   : > { %1790 = dma.hbm_to_vmem [thread:$0]  (!%p2242_p6), %s2597_s5, 512, %s2246_s22, [#allocation11], %s2128_s26, %s2128_s26, %s2129_s27  }
  0x45   : > { %s1947_s28 = scalar_lea.hbm %s2595_s3, 512 }
  0x46   : > { %p1948_p11 = scmp.ne.s32.totalorder %s2595_s3, %s1947_s28  ;;  %p1954_p0 = scmp.lt.u32.totalorder %s1947_s28, %s2595_s3 }
  0x48   : > { %p1950_p12 = pnand %p1948_p11, %p2258_p8 }
  0x4a   : > { %p1951_p13 = pneg %p1950_p12 }
  0x4c   : > { %p1956_p2 = pnand %p1954_p0, %p1951_p13 }
  0x4e   : > { %1959 = shalt.err (!%p1956_p2)
}
  0x4f   : > { %s1960_s19 = scalar_lea.vmem %s295_s24, 512  ;;  %p1968_p5 = scmp.lt.s32.totalorder %s295_s24, %s295_s24 }
  0x50   : > { %p1961_p4 = scmp.ne.s32.totalorder %s295_s24, %s1960_s19  ;;  %p1969_p10 = scmp.lt.s32.totalorder %s1960_s19, %s1960_s19 }
  0x52   : > { %p1963_p7 = pnand %p1961_p4, %p2258_p8  ;;  %p1970_p3 = por %p1969_p10, %p1968_p5 }
  0x54   : > { %p1964_p9 = pneg %p1963_p7 }
  0x56   : > { %p1971_p1 = pnand %p1970_p3, %p1964_p9 }
  0x58   : > { %1974 = shalt.err (!%p1971_p1)
}
  0x59   : > { %1787 = dma.hbm_to_vmem [thread:$0]  (!%p2242_p6), %s2595_s3, 512, %s295_s24, [#allocation8], %s2128_s26, %s2128_s26, %s2129_s27  }
  0x5a   : > { %s2130_s9 = smov [#allocation12]   ;;  %s1975_s29 = scalar_lea.hbm %s2599_s7, 512 }
  0x5b   : > { %s326_s12 = sshll.u32 %s2130_s9, 4  ;;  %p1976_p1 = scmp.ne.s32.totalorder %s2599_s7, %s1975_s29  ;;  %s327_s12 = int_to_ptr.vmem [resolvable:$true] %s326_s12 }
  0x5c   : > { %p1982_p12 = scmp.lt.u32.totalorder %s1975_s29, %s2599_s7 }
  0x5d   : > { %p1978_p3 = pnand %p1976_p1, %p2258_p8 }
  0x5f   : > { %p1979_p11 = pneg %p1978_p3 }
  0x61   : > { %p1984_p13 = pnand %p1982_p12, %p1979_p11 }
  0x63   : > { %1987 = shalt.err (!%p1984_p13)
}
  0x64   : > { %s1988_s24 = scalar_lea.vmem %s327_s12, 512  ;;  %p1996_p7 = scmp.lt.s32.totalorder %s327_s12, %s327_s12 }
  0x65   : > { %p1989_p0 = scmp.ne.s32.totalorder %s327_s12, %s1988_s24  ;;  %p1997_p9 = scmp.lt.s32.totalorder %s1988_s24, %s1988_s24 }
  0x67   : > { %p1991_p2 = pnand %p1989_p0, %p2258_p8  ;;  %p1998_p5 = por %p1997_p9, %p1996_p7 }
  0x69   : > { %p1992_p4 = pneg %p1991_p2 }
  0x6b   : > { %p1999_p10 = pnand %p1998_p5, %p1992_p4 }
  0x6d   : > { %2002 = shalt.err (!%p1999_p10)
}
  0x6e   : > { %1793 = dma.hbm_to_vmem [thread:$0]  (!%p2242_p6), %s2599_s7, 512, %s327_s12, [#allocation11], %s2128_s26, %s2128_s26, %s2129_s27  }
  0x6f   : > { %s1577_s20 = sadd.s32 4294967294, %s2123_s14   ;;  %s39_s18 = sadd.s32 1, %s2119_s13 }
  0x70   : > { %p41_p8 = scmp.ge.s32.totalorder %s39_s18, 2  ;;  %s46_s9 = sadd.s32 1, %s2111_s11 }
  0x71   : > { %p53_p1 = scmp.ne.s32.totalorder %s2111_s11, %s2107_s10  ;;  %p54_p3 = scmp.eq.s32.totalorder %s2123_s14, 0 }
  0x72   : > { %s2638_s18 = smov (%p41_p8, %s39_s18), 0  ;;  %p59_p12 = scmp.ne.s32.totalorder %s2107_s10, %s2103_s30 }
  0x73   : > { %p2359_p11 = por %p54_p3, %p53_p1  ;;  %s43_s26 = ssub.s32 %s2119_s13, %s2638_s18 }
  0x74   : > { %s2618_s27 = sadd.s32 4294967295, %s2123_s14   ;;  %p44_p13 = scmp.eq.s32.totalorder %s43_s26, 0 }
  0x75   : > { %p253_p6 = scmp.eq.s32.totalorder %s2618_s27, 1  ;;  %p2619_p0 = scmp.ne.s32.totalorder %s2612_s16, 0 }
  0x76   : > { %p259_p7 = scmp.eq.s32.totalorder %s1577_s20, 1  ;;  %p1806_p5 = scmp.lt.s32.totalorder %s2123_s14, 2 }
  0x77   : > { %p2371_p2 = por %p2619_p0, %p59_p12  ;;  %p2375_p4 = por %p253_p6, %p53_p1 }
  0x78   : > { %s2380_s29 = scalar_select %p44_p13, %s2111_s11, %s46_s9  }
  0x79   : > { %s2621_s28 = scalar_select %p2375_p4, 1, 0 }
  0x7a   : > { %p2382_p9 = por %p259_p7, %p59_p12  ;;  %s343_s23 = sand.u32 1, %s2111_s11  }
  0x7b   : > { %s1585_s25 = sshll.u32 %s2119_s13, 7  ;;  %s1584_s19 = sshll.u32 %s343_s23, 3 }
  0x7c   : > { %s2622_s21 = scalar_select %p2382_p9, 1, 0 }
  0x7d   : > { %s2392_s8 = scalar_lea.hbm %s2592_s0, %s1585_s25  ;;  %s347_s20 = scalar_lea.vmem [#allocation4], %s1584_s19 }
  0x7e   : > { %s354_s9 = sshll.u32 %s347_s20, 4  ;;  %p2396_p10 = pnand %p1806_p5, %p2359_p11  ;;  %s2400_s9 = int_to_ptr.vmem [resolvable:$true] %s354_s9 }
  0x7f   : > { %s344_s27 = scalar_lea.sflag [#allocation5], %s343_s23  ;;  %s2003_s1 = scalar_lea.hbm %s2392_s8, 128 }
  0x80   : > { %p2004_p8 = scmp.ne.s32.totalorder %s2392_s8, %s2003_s1  ;;  %p2005_p1 = pneg %p2396_p10 }
  0x81   : > { %s2008_s15 = scalar_lea.hbm %s2592_s0, 256  ;;  %p2009_p11 = scmp.lt.u32.totalorder %s2392_s8, %s2592_s0 }
  0x82   : > { %p2006_p3 = pnand %p2005_p1, %p2004_p8  ;;  %p2010_p6 = scmp.lt.u32.totalorder %s2008_s15, %s2003_s1 }
  0x83   : > { %p2012_p0 = scmp.lt.u32.totalorder %s2003_s1, %s2392_s8 }
  0x84   : > { %p2007_p12 = pneg %p2006_p3  ;;  %p2011_p13 = por %p2010_p6, %p2009_p11 }
  0x86   : > { %p2013_p7 = por %p2012_p0, %p2011_p13 }
  0x88   : > { %p2014_p5 = pnand %p2013_p7, %p2007_p12 }
  0x8a   : > { %2017 = shalt.err (!%p2014_p5)
}
  0x8b   : > { %s2018_s23 = scalar_lea.vmem %s2400_s9, 128  ;;  %s2131_s20 = smov [#allocation4]  }
  0x8c   : > { %p2019_p8 = scmp.ne.s32.totalorder %s2400_s9, %s2018_s23  ;;  %s2023_s25 = sshll.u32 %s2131_s20, 4  ;;  %s2024_s25 = int_to_ptr.vmem [resolvable:$false] %s2023_s25 }
  0x8d   : > { %s2025_s19 = scalar_lea.vmem %s2024_s25, 256  ;;  %p2026_p4 = scmp.lt.s32.totalorder %s2400_s9, %s2024_s25 }
  0x8e   : > { %p2021_p3 = pnand %p2019_p8, %p2005_p1  ;;  %p2027_p11 = scmp.lt.s32.totalorder %s2025_s19, %s2018_s23 }
  0x90   : > { %p2022_p9 = pneg %p2021_p3  ;;  %p2028_p6 = por %p2027_p11, %p2026_p4 }
  0x92   : > { %p2029_p13 = pnand %p2028_p6, %p2022_p9 }
  0x94   : > { %2032 = shalt.err (!%p2029_p13)
}
  0x95   : > { %1797 = dma.hbm_to_vmem [thread:$0]  (!%p2396_p10), %s2392_s8, 128, %s2400_s9, %s344_s27  }
  0x96   : > { %p2624_p12 = scmp.ne.s32.totalorder %s2613_s17, 0 }
  0x97   : > { %s2430_s1 = sand.u32 (!%p2624_p12), 1, %s2107_s10  }
  0x98   : > { %363 = sbr.rel (%p2624_p12) target bundleno = 1711 (0x6af), region = 56  ;;  %s1587_s15 = sshll.u32 (!%p2624_p12), %s2430_s1, 3 }
  0x99   : > { %s366_s24 = scalar_lea.sflag (!%p2624_p12), [#allocation5], %s2430_s1  ;;  %s369_s22 = scalar_lea.vmem (!%p2624_p12), [#allocation4], %s1587_s15 }
  0x9f   : > { %2086 = dma.done.wait (%p2371_p2), %s366_s24, 128  }
  0xa0   : > { %2088 = vsyncadd (%p2371_p2), %s366_s24, 4294967168  ;;  %p2625_p4 = scmp.ne.s32.totalorder %s2612_s16, 0 }
  0xa2   : > { %2090 = dma.done.wait (%p2625_p4), [#allocation8], 1024  }
  0xa3   : > { %2092 = vsyncadd (%p2625_p4), [#allocation8], 4294966272 }
  0xa4   : > { %2094 = dma.done.wait (%p2625_p4), [#allocation11], 1024  }
  0xa5   : > { %2096 = vsyncadd (%p2625_p4), [#allocation11], 4294966272  ;;  %v2132_v0 = vmov 0.0|0.0   ;;  %vm2133_vm0 = vmmov 0   ;;  %v2134_v1 = vmov 0.0   ;;  %v424_v2 = vld [vmem:[#allocation9] sm:$0xff] }
  0xa6   : > { %1737 = vmatprep.subr.bf16.mxu0 %v2132_v0  ;;  %1661 = vmatprep.mubr.msk.f32.mxu0 %vm2133_vm0, %v2134_v1  ;;  %v425_v3 = vld [vmem:[#allocation9 + $0x8] sm:$0xff]  ;;  %v426_v4 = vld [vmem:[#allocation9 + $0x10] sm:$0xff]  ;;  %v427_v6 = vld [vmem:[#allocation9 + $0x18] sm:$0xff]  ;;  %vm441_vm1 = vcmask 261120   ;;  %vm683_vm2 = vcmask 64512   ;;  %s2135_s9 = smov 120  }
  0xa7   : > { %1743 = vmatprep.subr.bf16.mxu1 %v2132_v0  ;;  %1672 = vmatprep.mubr.msk.f32.mxu1 %vm2133_vm0, %v2134_v1  ;;  %v1738_v5 = vpack.c.bf16 %v425_v3, %v424_v2  ;;  %v1741_v7 = vpack.c.bf16 %v427_v6, %v426_v4  ;;  %v428_v8 = vld [vmem:[#allocation10] sm:$0xff]  ;;  %v429_v9 = vld [vmem:[#allocation10 + $0x8] sm:$0xff]  ;;  %v434_v13 = vld [vmem:[%s369_s22] sm:$0xff]  ;;  %s2136_s26 = smov 112   ;;  %s2137_s27 = smov 104   ;;  %vm1353_vm3 = vcmask 130048  }
  0xa8   : > { %v596_v10 = vld [vmem:[#allocation7] sm:$0xff]  ;;  %v597_v11 = vld [vmem:[#allocation7 + $0x8] sm:$0xff]  ;;  %v1744_v12 = vpack.c.bf16 %v429_v9, %v428_v8  ;;  %v598_v15 = vld [vmem:[#allocation7 + $0x10] sm:$0xff]  ;;  %s2138_s25 = smov 8   ;;  %s2139_s19 = smov 16   ;;  %vm1355_vm4 = vcmask 195584  }
  0xa9   : > { %1739 = vmatpush3.bf16.msra.mxu0 %v1738_v5  ;;  %v1750_v14 = vpack.c.bf16 %v597_v11, %v596_v10  ;;  %v599_v16 = vld [vmem:[#allocation7 + $0x18] sm:$0xff]  ;;  %v430_v18 = vld [vmem:[#allocation10 + $0x10] sm:$0xff]  ;;  %v1593_v21 = vld [vmem:[%s2596_s4] ss:$0 sm:$0xff]  ;;  %s2140_s24 = smov 24   ;;  %s2626_s22 = sld [smem:[#allocation18_spill]] }
  0xaa   : > { %1740 = vmatprep.subr.bf16.mxu0 %v2132_v0  ;;  %1745 = vmatpush3.bf16.msra.mxu1 %v1744_v12  ;;  %v1753_v17 = vpack.c.bf16 %v599_v16, %v598_v15  ;;  %v431_v19 = vld [vmem:[#allocation10 + $0x18] sm:$0xff]  ;;  %v1597_v25 = vld [vmem:[%s2594_s2] ss:$0 sm:$0xff]  ;;  %s2627_s12 = sld [smem:[#allocation20_spill]]  ;;  %s2628_s20 = sld [smem:[#allocation21_spill]] }
  0xab   : > { %1746 = vmatprep.subr.bf16.mxu1 %v2132_v0  ;;  %v1747_v20 = vpack.c.bf16 %v431_v19, %v430_v18  ;;  %v1595_v30 = vld [vmem:[%s2598_s6] ss:$0 sm:$0xff]  ;;  %v1358_v18 = vld [vmem:[#allocation12 + $0x8] sm:$0xff]  ;;  %p2629_p9 = scmp.ne.s32.totalorder %s2621_s28, 0 }
  0xad   : > { %1742 = vmatpush3.bf16.msra.mxu0 %v1741_v7 }
  0xae   : > { %1749 = vmatprep.subr.bf16.mxu0 %v2132_v0  ;;  %1748 = vmatpush3.bf16.msra.mxu1 %v1747_v20 }
  0xaf   : > { %1686 = vmatprep.subr.mxu1 %v2134_v1  ;;  %s1614_s8 = sshll.u32 %s2626_s22, 7 }
  0xb0   : > { %1662 = vmatmul.mubr.msk.f32.vlgmr.msra.gmra.mrb[0].mxu0 %vm441_vm1, %v434_v13 }
  0xb1   : > { %1751 = vmatpush3.bf16.msra.mxu0 %v1750_v14  ;;  %1683 = vmatprep.mubr.msk.f32.mxu0 %vm2133_vm0, %v2134_v1 }
  0xb2   : > { %1752 = vmatprep.subr.bf16.mxu0 %v2132_v0  ;;  %1673 = vmatmul.mubr.msk.f32.vlgmr.msra.gmra.mrb[0].mxu1 %vm441_vm1, %v434_v13 }
  0xb3   : > { %1688 = vmatprep.mubr.msk.f32.mxu1 %vm2133_vm0, %v2134_v1 }
  0xb5   : > { %1754 = vmatpush3.bf16.msra.mxu0 %v1753_v17  ;;  %v1357_v17 = vld [vmem:[#allocation12] sm:$0xff] }
  0xb6   : > { %1706 = vmatprep.subr.mxu0 %v2134_v1  ;;  %v1756_v20 = vpack.c.bf16 %v1358_v18, %v1357_v17 }
  0xb8   : > { %1684 = vmatmul.mubr.msk.f32.vlgmr.msra.gmra.mrb[2].mxu0 %vm441_vm1, %v434_v13 }
  0xb9   : > { %1708 = vmatprep.mubr.msk.f32.mxu0 %vm2133_vm0, %v2134_v1 }
 0x183   : > { %v511_v22 = vpop.f32.mrb[0].mxu0 }
 0x184   : > { %v512_v23 = vadd.f32 %v1593_v21, %v511_v22  ;;  %v1663_v24 = vpop.f32.mrb[1].mxu0  ;;  %v1359_v21 = vld [vmem:[#allocation12 + $0x10] sm:$0xff]  ;;  %v1360_v22 = vld [vmem:[#allocation12 + $0x18] sm:$0xff] }
 0x185   : > { %v588_v31 = vpop.f32.mrb[0].mxu1  ;;  %v1759_v24 = vpack.c.bf16 %v1360_v22, %v1359_v21 }
 0x186   : > { %515 = vst.msk [vmem:[#allocation2] sm:$0xff] %vm441_vm1, %v512_v23  ;;  %v589_v32 = vadd.f32 %v1595_v30, %v588_v31  ;;  %v1674_v33 = vpop.f32.mrb[1].mxu1 }
 0x188   : > { %592 = vst.msk [vmem:[#allocation3] sm:$0xff] %vm441_vm1, %v589_v32 }
 0x18b   : > { %v677_v26 = vpop.f32.mrb[2].mxu0 }
 0x18c   : > { %v678_v27 = vadd.f32 %v1597_v25, %v677_v26  ;;  %v1685_v28 = vpop.f32.mrb[3].mxu0 }
 0x18d   : > { %v681_v29 = vld [vmem:[#allocation2] sm:$0xff] }
 0x18e   : > { %1687 = vmatpush3.xpose.msk.msra.mxu1 %vm683_vm2, %v681_v29  ;;  %844 = vrot.lane.b32.xlu1 %v678_v27, %s2135_s9 }
 0x18f   : > { %1691 = vmatprep.subr.mxu1 %v2134_v1  ;;  %v682_v34 = vld [vmem:[#allocation3] sm:$0xff] }
 0x191   : > { %1689 = vmatmul.mubr.msk.f32.vlgmr.msra.gmra.mrb[2].mxu1 %vm683_vm2, %v678_v27 }
 0x192   : > { %1012 = vrot.lane.b32.xlu1 %v681_v29, %s2136_s26  ;;  %1693 = vmatprep.mubr.msk.f32.mxu1 %vm2133_vm0, %v2134_v1 }
 0x193   : > { %1692 = vmatpush3.msra.mxu1 %v682_v34 }
 0x194   : > { %1696 = vmatprep.subr.mxu1 %v2134_v1 }
 0x196   : > { %1010 = vrot.lane.b32.xlu1 %v678_v27, %s2136_s26 }
 0x19a   : > { %1177 = vrot.lane.b32.xlu1 %v681_v29, %s2137_s27 }
 0x19e   : > { %1175 = vrot.lane.b32.xlu1 %v678_v27, %s2137_s27 }
 0x1a2   : > { %1097 = vrot.lane.b32.xlu1 %v682_v34, %s2136_s26 }
 0x200   : > { %v845_v35 = vpop.permute.xlu1 %844 }
 0x204   : > { %v1013_v36 = vpop.permute.xlu1 %1012 }
 0x205   : > { %1707 = vmatpush3.xpose.msk.msra.mxu0 %vm683_vm2, %v1013_v36 }
 0x206   : > { %1716 = vmatprep.subr.mxu0 %v2134_v1 }
 0x208   : > { %v1011_v37 = vpop.permute.xlu1 %1010 }
 0x209   : > { %1709 = vmatmul.mubr.msk.f32.vlgmr.msra.gmra.mrb[4].mxu0 %vm683_vm2, %v1011_v37 }
 0x20a   : > { %1718 = vmatprep.mubr.msk.f32.mxu0 %vm2133_vm0, %v2134_v1 }
 0x20c   : > { %v1178_v38 = vpop.permute.xlu1 %1177 }
 0x20d   : > { %1717 = vmatpush3.xpose.msk.msra.mxu0 %vm683_vm2, %v1178_v38 }
 0x20e   : > { %1755 = vmatprep.subr.bf16.mxu0 %v2132_v0 }
 0x210   : > { %v1176_v39 = vpop.permute.xlu1 %1175 }
 0x211   : > { %1719 = vmatmul.mubr.msk.f32.vlgmr.msra.gmra.mrb[6].mxu0 %vm683_vm2, %v1176_v39 }
 0x212   : > { %1734 = vmatprep.mubr.msk.f32.mxu0 %vm2133_vm0, %v2134_v1  ;;  %1757 = vmatpush3.bf16.msra.mxu0 %v1756_v20 }
 0x213   : > { %1758 = vmatprep.subr.bf16.mxu0 %v2132_v0 }
 0x214   : > { %v1098_v3 = vpop.permute.xlu1 %1097 }
 0x216   : > { %1760 = vmatpush3.bf16.msra.mxu0 %v1759_v24 }
 0x264   : > { %v756_v40 = vpop.f32.mrb[2].mxu1 }
 0x265   : > { %v1690_v41 = vpop.f32.mrb[3].mxu1  ;;  %v760_v42 = vsel %vm683_vm2, %v756_v40, -inf }
 0x266   : > { %761 = vmax.xlane.f32.xlu0 %v760_v42 }
 0x27c   : > { %846 = vrot.lane.b32.xlu0 %v681_v29, %s2135_s9 }
 0x2dc   : > { %v1084_v43 = vpop.f32.mrb[4].mxu0 }
 0x2dd   : > { %v1710_v44 = vpop.f32.mrb[5].mxu0  ;;  %v1088_v45 = vsel %vm683_vm2, %v1084_v43, -inf }
 0x2de   : > { %1089 = vmax.xlane.f32.xlu0 %v1088_v45  ;;  %v1611_v44 = vld [vmem:[%s2627_s12] ss:$0 sm:$0xff] }
 0x2e4   : > { %v1249_v46 = vpop.f32.mrb[6].mxu0 }
 0x2e5   : > { %v1720_v47 = vpop.f32.mrb[7].mxu0  ;;  %v1253_v48 = vsel %vm683_vm2, %v1249_v46, -inf }
 0x2e6   : > { %1254 = vmax.xlane.f32.xlu1 %v1253_v48 }
 0x2f3   : > { %v762_v49 = vpop.xlane.xlu0 %761 }
 0x2f4   : > { %v763_v50 = vsub.f32 %v756_v40, %v762_v49  ;;  %932 = vrot.lane.b32.xlu0 %v682_v34, %s2135_s9  ;;  %s419_s9 = scalar_lea.vmem [#allocation13], %s1587_s15  ;;  %s2141_s15 = smov [#allocation13]  }
 0x2f5   : > { %s1457_s26 = sshll.u32 %s419_s9, 4  ;;  %s2037_s22 = sshll.u32 %s2141_s15, 4  ;;  %s2544_s26 = int_to_ptr.vmem [resolvable:$true] %s1457_s26  ;;  %s2038_s22 = int_to_ptr.vmem [resolvable:$false] %s2037_s22 }
 0x2f6   : > { %v764_v51 = vmul.f32 1.442695, %v763_v50  ;;  %s2039_s16 = scalar_lea.vmem %s2038_s22, 256  ;;  %p2040_p0 = scmp.lt.s32.totalorder %s2544_s26, %s2038_s22 }
 0x2f7   : > { %v847_v53 = vpop.permute.xlu0 %846 }
 0x2f8   : > { %1875 = vpow2.f32 %v764_v51 }
 0x302   : > { %v1876_v52 = vpop.eup %1875 }
 0x303   : > { %1694 = vmatmul.mubr.msk.f32.vlgmr.msra.gmra.mrb[4].mxu1 %vm683_vm2, %v1876_v52  ;;  %v766_v15 = vsel %vm683_vm2, %v1876_v52, 0.0 }
 0x304   : > { %1697 = vmatpush3.xpose.msk.msra.mxu1 %vm683_vm2, %v847_v53  ;;  %1698 = vmatprep.mubr.msk.f32.mxu1 %vm2133_vm0, %v2134_v1 }
 0x305   : > { %1701 = vmatprep.subr.mxu1 %v2134_v1 }
 0x307   : > { %1699 = vmatmul.mubr.msk.f32.vlgmr.msra.gmra.mrb[6].mxu1 %vm683_vm2, %v845_v35 }
 0x308   : > { %1703 = vmatprep.mubr.msk.f32.mxu1 %vm2133_vm0, %v2134_v1 }
 0x36b   : > { %v1090_v54 = vpop.xlane.xlu0 %1089 }
 0x36c   : > { %v1091_v55 = vsub.f32 %v1084_v43, %v1090_v54 }
 0x36e   : > { %v1092_v62 = vmul.f32 1.442695, %v1091_v55 }
 0x36f   : > { %v933_v56 = vpop.permute.xlu0 %932 }
 0x370   : > { %1702 = vmatpush3.msra.mxu1 %v933_v56  ;;  %1877 = vpow2.f32 %v1092_v62 }
 0x371   : > { %1711 = vmatprep.subr.mxu1 %v2134_v1 }
 0x373   : > { %v1255_v4 = vpop.xlane.xlu1 %1254 }
 0x374   : > { %v1256_v5 = vsub.f32 %v1249_v46, %v1255_v4 }
 0x376   : > { %v1257_v8 = vmul.f32 1.442695, %v1256_v5 }
 0x37a   : > { %v1878_v63 = vpop.eup %1877 }
 0x37b   : > { %v1094_v2 = vsel %vm683_vm2, %v1878_v63, 0.0 }
 0x3d6   : > { %v2513_v57 = vpop.f32.mrb[4].mxu1 }
 0x3d7   : > { %v1695_v58 = vpop.f32.mrb[5].mxu1 }
 0x3da   : > { %v918_v59 = vpop.f32.mrb[6].mxu1 }
 0x3db   : > { %v1700_v60 = vpop.f32.mrb[7].mxu1  ;;  %v922_v61 = vsel %vm683_vm2, %v918_v59, -inf }
 0x3dc   : > { %923 = vmax.xlane.f32.xlu1 %v922_v61 }
 0x3ed   : > { %1262 = vrot.lane.b32.xlu1 %v682_v34, %s2137_s27 }
 0x411   : > { %1095 = vadd.xlane.f32.xlu1 %v1094_v2 }
 0x469   : > { %v924_v6 = vpop.xlane.xlu1 %923 }
 0x46a   : > { %v925_v7 = vsub.f32 %v918_v59, %v924_v6 }
 0x46c   : > { %v926_v9 = vmul.f32 1.442695, %v925_v7 }
 0x46d   : > { %v1263_v13 = vpop.permute.xlu1 %1262 }
 0x46e   : > { %1879 = vpow2.f32 %v926_v9 }
 0x46f   : > { %1881 = vpow2.f32 %v1257_v8 }
 0x478   : > { %v1880_v10 = vpop.eup %1879 }
 0x479   : > { %1704 = vmatmul.mubr.msk.f32.vlgmr.msra.gmra.mrb[8].mxu1 %vm683_vm2, %v1880_v10  ;;  %v928_v11 = vsel %vm683_vm2, %v1880_v10, 0.0  ;;  %v1882_v12 = vpop.eup %1881 }
 0x47a   : > { %1712 = vmatpush3.msra.mxu1 %v1098_v3  ;;  %929 = vadd.xlane.f32.xlu0 %v928_v11  ;;  %v1259_v14 = vsel %vm683_vm2, %v1882_v12, 0.0 }
 0x47b   : > { %1713 = vmatprep.mubr.msk.f32.mxu1 %vm2133_vm0, %v2134_v1  ;;  %1721 = vmatprep.subr.mxu1 %v2134_v1 }
 0x47d   : > { %1714 = vmatmul.mubr.msk.f32.vlgmr.msra.gmra.mrb[10].mxu1 %vm683_vm2, %v1878_v63 }
 0x47e   : > { %1722 = vmatpush3.msra.mxu1 %v1263_v13  ;;  %1260 = vadd.xlane.f32.xlu0 %v1259_v14 }
 0x47f   : > { %1723 = vmatprep.mubr.msk.f32.mxu1 %vm2133_vm0, %v2134_v1 }
 0x481   : > { %1724 = vmatmul.mubr.msk.f32.vlgmr.msra.gmra.mrb[12].mxu1 %vm683_vm2, %v1882_v12 }
 0x482   : > { %767 = vadd.xlane.f32.xlu0 %v766_v15 }
 0x49e   : > { %v1096_v19 = vpop.xlane.xlu1 %1095 }
 0x507   : > { %v930_v16 = vpop.xlane.xlu0 %929 }
 0x508   : > { %1883 = vrcp.f32 %v930_v16 }
 0x509   : > { %1885 = vrcp.f32 %v1096_v19 }
 0x50b   : > { %v1261_v23 = vpop.xlane.xlu0 %1260 }
 0x50c   : > { %1887 = vrcp.f32 %v1261_v23 }
 0x50f   : > { %v768_v35 = vpop.xlane.xlu0 %767 }
 0x510   : > { %1889 = vrcp.f32 %v768_v35 }
 0x512   : > { %v1884_v1 = vpop.eup %1883 }
 0x513   : > { %v1886_v28 = vpop.eup %1885 }
 0x516   : > { %v1888_v32 = vpop.eup %1887 }
 0x51a   : > { %v1890_v36 = vpop.eup %1889 }
 0x51b   : > { %v843_v38 = vmul.f32 %v1890_v36, %v2513_v57 }
 0x54c   : > { %v1004_v25 = vpop.f32.mrb[8].mxu1 }
 0x54d   : > { %v1009_v26 = vmul.f32 %v1884_v1, %v1004_v25  ;;  %v1705_v27 = vpop.f32.mrb[9].mxu1 }
 0x54f   : > { %1341 = vrot.lane.b32.xlu1 %v1009_v26, %s2138_s25  ;;  %s2542_s25 = scalar_lea.hbm %s2628_s20, %s1614_s8 }
 0x550   : > { %v1169_v29 = vpop.f32.mrb[10].mxu1 }
 0x551   : > { %v1174_v30 = vmul.f32 %v1886_v28, %v1169_v29  ;;  %v1715_v31 = vpop.f32.mrb[11].mxu1 }
 0x553   : > { %1345 = vrot.lane.b32.xlu0 %v1174_v30, %s2139_s19  ;;  %s1443_s19 = scalar_lea.sflag [#allocation6], %s2430_s1 }
 0x554   : > { %v1334_v0 = vpop.f32.mrb[12].mxu1 }
 0x555   : > { %v1339_v33 = vmul.f32 %v1888_v32, %v1334_v0  ;;  %v1725_v34 = vpop.f32.mrb[13].mxu1 }
 0x557   : > { %1349 = vrot.lane.b32.xlu1 %v1339_v33, %s2140_s24  ;;  %s2033_s24 = scalar_lea.vmem %s2544_s26, 128 }
 0x558   : > { %p2034_p2 = scmp.ne.s32.totalorder %s2544_s26, %s2033_s24  ;;  %p2041_p7 = scmp.lt.s32.totalorder %s2039_s16, %s2033_s24 }
 0x55a   : > { %p2035_p10 = pnand %p2034_p2, %p2629_p9  ;;  %p2042_p5 = por %p2041_p7, %p2040_p0 }
 0x55c   : > { %p2036_p1 = pneg %p2035_p10 }
 0x55e   : > { %p2043_p8 = pnand %p2042_p5, %p2036_p1 }
 0x5c1   : > { %v1342_v37 = vpop.permute.xlu1 %1341 }
 0x5c2   : > { %v1352_v40 = vsel %vm683_vm2, %v843_v38, %v1342_v37 }
 0x5c5   : > { %v1346_v39 = vpop.permute.xlu0 %1345 }
 0x5c6   : > { %v1354_v41 = vsel %vm1353_vm3, %v1352_v40, %v1346_v39 }
 0x5c9   : > { %v1350_v42 = vpop.permute.xlu1 %1349 }
 0x5ca   : > { %v1356_v43 = vsel %vm1355_vm4, %v1354_v41, %v1350_v42 }
 0x5cb   : > { %1735 = vmatmul.mubr.msk.f32.vlgmr.msra.gmra.mrb[8].mxu0 %vm441_vm1, %v1356_v43 }
 0x69e   : > { %v1437_v45 = vpop.f32.mrb[8].mxu0 }
 0x69f   : > { %v1438_v46 = vadd.f32 %v1611_v44, %v1437_v45  ;;  %v1736_v47 = vpop.f32.mrb[9].mxu0 }
 0x6a1   : > { %1441 = vst.msk [vmem:[%s419_s9] sm:$0xff] %vm441_vm1, %v1438_v46 }
 0x6a2   : > { %2046 = shalt.err (!%p2043_p8)
}
 0x6a3   : > { %s2047_s1 = scalar_lea.hbm %s2542_s25, 128  ;;  %s2051_s8 = scalar_lea.hbm %s2628_s20, 256 }
 0x6a4   : > { %p2048_p3 = scmp.ne.s32.totalorder %s2542_s25, %s2047_s1  ;;  %p2052_p13 = scmp.lt.u32.totalorder %s2542_s25, %s2628_s20 }
 0x6a5   : > { %p2053_p12 = scmp.lt.u32.totalorder %s2051_s8, %s2047_s1  ;;  %p2055_p2 = scmp.lt.u32.totalorder %s2047_s1, %s2542_s25 }
 0x6a6   : > { %p2049_p11 = pnand %p2048_p3, %p2629_p9 }
 0x6a7   : > { %p2054_p4 = por %p2053_p12, %p2052_p13 }
 0x6a8   : > { %p2050_p6 = pneg %p2049_p11 }
 0x6a9   : > { %p2056_p10 = por %p2055_p2, %p2054_p4 }
 0x6ab   : > { %p2057_p1 = pnand %p2056_p10, %p2050_p6 }
 0x6ad   : > { %2060 = shalt.err (!%p2057_p1)
}
 0x6ae   : > { %1779 = dma.vmem_to_hbm [thread:$0]  (%p2629_p9), %s2544_s26, 128, %s2542_s25, %s1443_s19  }
 0x6af PF: > { %s1469_s23 = sand.u32 1, %s2103_s30   ;;  %p2630_p0 = scmp.ne.s32.totalorder %s2622_s21, 0 }
 0x6b0   : > { %p2631_p7 = scmp.ge.s32.totalorder %s2123_s14, 2  ;;  %s1470_s24 = scalar_lea.sflag [#allocation6], %s1469_s23 }
 0x6b2   : > { %p1799_p5 = pnand %p2631_p7, %p2630_p0 }
 0x6b4   : > { %2098 = dma.done.wait (!%p1799_p5), %s1470_s24, 128  }
 0x6b5   : > { %2100 = vsyncadd (!%p1799_p5), %s1470_s24, 4294967168  ;;  %s27_s14 = sadd.s32 1, %s2123_s14   ;;  %s2632_s30 = smov %s2107_s10 }
 0x6b6   : > { %p24_p8 = scmp.ge.s32.totalorder %s27_s14, 4   ;;  %s2633_s10 = smov %s2111_s11 }
 0x6b7   : > { %s2634_s11 = smov %s2380_s29  ;;  %s2635_s12 = smov %s2119_s13 }
 0x6b8   : > { %s2636_s13 = smov %s2638_s18  ;;  %26 = sbr.rel (!%p24_p8) target bundleno = 12 (0xc), region = 122 }
 0x6bf   :  { %1475 = vsyncpa [#allocation5], 1 }
 0x6c0   :  { %1477 = vsyncpa [#allocation5 + $0x1], 1 }
 0x6c1   :  { %1478 = vsyncpa [#allocation8], 1 }
 0x6c2   :  { %1479 = vsyncpa [#allocation11], 1 }
 0x6c3   :  { %1480 = vsyncpa [#allocation6], 1 }
 0x6c4   :  { %1482 = vsyncpa [#allocation6 + $0x1], 1 }

</bundles_post_ra>
